<compile_context>
chip_gen: v6e
topology: v6e:2x2x1
jax: 0.10.0
libtpu: 0.0.40
codegen_flags: <defaults>
</compile_context>

<pallas_src>
import functools

import jax
import jax.numpy as jnp
from jax.experimental import pallas as pl
from jax.experimental.pallas import tpu as pltpu

LANE = 128  # TPU lane width; all feature dims are padded to this.


def _round_up(x, m):
    return (x + m - 1) // m * m


def _mlp_kernel(num_layers, x_ref, w_ref, b_ref, out_ref):
    """One batch tile of the full MLP.

    x_ref:   (BM, 128)   bf16   padded input rows
    w_ref:   (L, 128, 128) bf16 stacked, zero-padded weights (in, out) layout
    b_ref:   (L, 1, 128) f32    stacked, zero-padded biases
    out_ref: (BM, 128)   f32    padded logits (only [:, :7] is meaningful)
    """
    h = x_ref[...]  # bf16 (BM, 128)
    for l in range(num_layers):
        acc = jnp.dot(h, w_ref[l], preferred_element_type=jnp.float32)  # f32 MXU acc
        acc = acc + b_ref[l]  # bias add in f32 (v5e-safe)
        if l < num_layers - 1:
            acc = jnp.maximum(acc, 0.0)          # ReLU in f32
            h = acc.astype(jnp.bfloat16)         # bf16 operand for next MXU pass
        else:
            out_ref[...] = acc                   # final dense: no activation


def pack_params(params, num_dense):
    """Pack PyTorch-Linear-style params into padded stacks for the kernel.

    Weights are stored (in_features, out_features) (already transposed vs torch),
    zero-padded to (128, 128) and stacked to (L, 128, 128) bf16.
    Biases are zero-padded to 128 lanes and stacked to (L, 1, 128) f32.
    """
    ws = [params["w1"]] + [params[f"w_h{i}"] for i in range(num_dense)] + [params["wf"]]
    bs = [params["b1"]] + [params[f"b_h{i}"] for i in range(num_dense)] + [params["bf"]]
    num_layers = len(ws)

    w_stack = jnp.zeros((num_layers, LANE, LANE), jnp.float32)
    b_stack = jnp.zeros((num_layers, 1, LANE), jnp.float32)
    for l, (w, b) in enumerate(zip(ws, bs)):
        fi, fo = w.shape
        assert fi <= LANE and fo <= LANE, (fi, fo)
        w_stack = w_stack.at[l, :fi, :fo].set(w)
        b_stack = b_stack.at[l, 0, :fo].set(b)
    return w_stack.astype(jnp.bfloat16), b_stack  # biases stay f32


def vanilla_policy_forward(x, w_stack, b_stack):
    """x: (B, 6, 7) float32 boards -> logits (B, 7) float32."""
    B = x.shape[0]
    num_layers = w_stack.shape[0]

    # Flatten boards and zero-pad features 42 -> 128 (glue, same as torch reshape).
    x2d = x.reshape(B, 42).astype(jnp.float32)

    # Pad batch to a multiple of 16 (bf16 sublane tile); tile large batches at 256.
    b_pad = _round_up(max(B, 16), 16)
    if b_pad > 256:
        bm = 256
        b_pad = _round_up(b_pad, bm)
    else:
        bm = b_pad

    x_pad = (
        jnp.zeros((b_pad, LANE), jnp.float32)
        .at[:B, :42]
        .set(x2d)
        .astype(jnp.bfloat16)
    )

    grid = (b_pad // bm,)
    out_padded = pl.pallas_call(
        functools.partial(_mlp_kernel, num_layers),
        out_shape=jax.ShapeDtypeStruct((b_pad, LANE), jnp.float32),
        grid=grid,
        in_specs=[
            pl.BlockSpec((bm, LANE), lambda i: (i, 0)),                  # batch tile
            pl.BlockSpec((num_layers, LANE, LANE), lambda i: (0, 0, 0)),  # weights (resident)
            pl.BlockSpec((num_layers, 1, LANE), lambda i: (0, 0, 0)),     # biases (resident)
        ],
        out_specs=pl.BlockSpec((bm, LANE), lambda i: (i, 0)),
        compiler_params=pltpu.CompilerParams(dimension_semantics=("parallel",)),
    )(x_pad, w_stack, b_stack)

    return out_padded[:B, :7]


def init_params(key, num_dense=2, dense_dim=100):
    """Deterministic init mimicking PyTorch Linear default (U(-1/sqrt(in), 1/sqrt(in)))."""
    params = {}

    def linear(key, fan_in, fan_out):
        kw, kb = jax.random.split(key)
        bound = 1.0 / jnp.sqrt(jnp.float32(fan_in))
        # weight stored as (in, out) so kernel / reference can do x @ W
        w = jax.random.uniform(kw, (fan_in, fan_out), jnp.float32, -bound, bound)
        b = jax.random.uniform(kb, (fan_out,), jnp.float32, -bound, bound)
        return w, b

    keys = jax.random.split(key, num_dense + 2)
    params["w1"], params["b1"] = linear(keys[0], 42, dense_dim)
    for i in range(num_dense):
        params[f"w_h{i}"], params[f"b_h{i}"] = linear(keys[1 + i], dense_dim, dense_dim)
    params["wf"], params["bf"] = linear(keys[-1], dense_dim, 7)
    return params


def reference_forward(x, params, num_dense):
    """Plain-JAX f32 reference (matches the PyTorch forward) for correctness check."""
    B = x.shape[0]
    h = x.reshape(B, 42)
    h = jnp.maximum(h @ params["w1"] + params["b1"], 0.0)
    for i in range(num_dense):
        h = jnp.maximum(h @ params[f"w_h{i}"] + params[f"b_h{i}"], 0.0)
    return h @ params["wf"] + params["bf"]


if __name__ == "__main__":
    NUM_DENSE = 2
    DENSE_DIM = 100
    BATCH = 8  # batch of Connect-4 boards; wrapper pads batch/features as needed

    key = jax.random.PRNGKey(0)
    k_params, k_x = jax.random.split(key)

    params = init_params(k_params, num_dense=NUM_DENSE, dense_dim=DENSE_DIM)
    w_stack, b_stack = pack_params(params, NUM_DENSE)

    # Connect-4 style board states, shape (B, 6, 7)
    x = jax.random.normal(k_x, (BATCH, 6, 7), dtype=jnp.float32)

    logits = vanilla_policy_forward(x, w_stack, b_stack)
    logits = jax.block_until_ready(logits)

    ref = reference_forward(x, params, NUM_DENSE)
    assert logits.shape == (BATCH, 7), logits.shape
    # bf16 matmul operands vs f32 reference -> relaxed tolerance.
    assert jnp.allclose(logits, ref, atol=3e-2, rtol=3e-2), (logits, ref)

    # TODO(synk): with_cnn=True branch (Conv2d(1,2,5,padding='same')) not implemented;
    # default constructor uses with_cnn=False so this path matches the module exactly.
    print("KERNEL_OK")
</pallas_src>

<mosaic_0001>
module attributes {stable_mosaic.version = 11 : i64} {
  func.func @_mlp_kernel(%arg0: i32, %arg1: memref<16x128xbf16, #tpu.memory_space<vmem>>, %arg2: memref<4x128x128xbf16, #tpu.memory_space<vmem>>, %arg3: memref<4x1x128xf32, #tpu.memory_space<vmem>>, %arg4: memref<16x128xf32, #tpu.memory_space<vmem>>) attributes {dimension_semantics = [#tpu.dimension_semantics<parallel>], iteration_bounds = array<i64: 1>, scalar_prefetch = 0 : i64, scratch_operands = 0 : i64, tpu.core_type = #tpu.core_type<tc>, window_params = [{transform_indices = @transform_0, window_bounds = array<i64: 16, 128>}, {pipeline_mode = #tpu.pipeline_mode<synchronous>, transform_indices = @transform_1, window_bounds = array<i64: 4, 128, 128>}, {pipeline_mode = #tpu.pipeline_mode<synchronous>, transform_indices = @transform_2, window_bounds = array<i64: 4, 1, 128>}, {transform_indices = @transform_3, window_bounds = array<i64: 16, 128>}]} {
    %c0 = arith.constant 0 : index
    %c0_0 = arith.constant 0 : index
    %0 = vector.load %arg1[%c0, %c0_0] : memref<16x128xbf16, #tpu.memory_space<vmem>>, vector<16x128xbf16>
    %c0_1 = arith.constant 0 : index
    %c0_2 = arith.constant 0 : index
    %c0_3 = arith.constant 0 : index
    %1 = vector.load %arg2[%c0_1, %c0_2, %c0_3] : memref<4x128x128xbf16, #tpu.memory_space<vmem>>, vector<1x128x128xbf16>
    %2 = vector.shape_cast %1 : vector<1x128x128xbf16> to vector<128x128xbf16>
    %cst = arith.constant dense<0.000000e+00> : vector<16x128xf32>
    %3 = tpu.matmul %0, %2, %cst {dimension_numbers = #tpu.dot_dimension_numbers<[1], [0], [0], [1], [0, 0, 1, 1], [], []>} : vector<16x128xbf16>, vector<128x128xbf16>, vector<16x128xf32> -> vector<16x128xf32>
    %c0_4 = arith.constant 0 : index
    %c0_5 = arith.constant 0 : index
    %c0_6 = arith.constant 0 : index
    %4 = vector.load %arg3[%c0_4, %c0_5, %c0_6] : memref<4x1x128xf32, #tpu.memory_space<vmem>>, vector<1x1x128xf32>
    %5 = vector.shape_cast %4 : vector<1x1x128xf32> to vector<1x128xf32>
    %6 = vector.broadcast %5 : vector<1x128xf32> to vector<16x128xf32>
    %7 = arith.addf %3, %6 : vector<16x128xf32>
    %cst_7 = arith.constant 0.000000e+00 : f32
    %8 = vector.broadcast %cst_7 : f32 to vector<16x128xf32>
    %9 = arith.maximumf %7, %8 : vector<16x128xf32>
    %10 = arith.truncf %9 : vector<16x128xf32> to vector<16x128xbf16>
    %c1 = arith.constant 1 : index
    %c0_8 = arith.constant 0 : index
    %c0_9 = arith.constant 0 : index
    %11 = vector.load %arg2[%c1, %c0_8, %c0_9] : memref<4x128x128xbf16, #tpu.memory_space<vmem>>, vector<1x128x128xbf16>
    %12 = vector.shape_cast %11 : vector<1x128x128xbf16> to vector<128x128xbf16>
    %cst_10 = arith.constant dense<0.000000e+00> : vector<16x128xf32>
    %13 = tpu.matmul %10, %12, %cst_10 {dimension_numbers = #tpu.dot_dimension_numbers<[1], [0], [0], [1], [0, 0, 1, 1], [], []>} : vector<16x128xbf16>, vector<128x128xbf16>, vector<16x128xf32> -> vector<16x128xf32>
    %c1_11 = arith.constant 1 : index
    %c0_12 = arith.constant 0 : index
    %c0_13 = arith.constant 0 : index
    %14 = vector.load %arg3[%c1_11, %c0_12, %c0_13] : memref<4x1x128xf32, #tpu.memory_space<vmem>>, vector<1x1x128xf32>
    %15 = vector.shape_cast %14 : vector<1x1x128xf32> to vector<1x128xf32>
    %16 = vector.broadcast %15 : vector<1x128xf32> to vector<16x128xf32>
    %17 = arith.addf %13, %16 : vector<16x128xf32>
    %cst_14 = arith.constant 0.000000e+00 : f32
    %18 = vector.broadcast %cst_14 : f32 to vector<16x128xf32>
    %19 = arith.maximumf %17, %18 : vector<16x128xf32>
    %20 = arith.truncf %19 : vector<16x128xf32> to vector<16x128xbf16>
    %c2 = arith.constant 2 : index
    %c0_15 = arith.constant 0 : index
    %c0_16 = arith.constant 0 : index
    %21 = vector.load %arg2[%c2, %c0_15, %c0_16] : memref<4x128x128xbf16, #tpu.memory_space<vmem>>, vector<1x128x128xbf16>
    %22 = vector.shape_cast %21 : vector<1x128x128xbf16> to vector<128x128xbf16>
    %cst_17 = arith.constant dense<0.000000e+00> : vector<16x128xf32>
    %23 = tpu.matmul %20, %22, %cst_17 {dimension_numbers = #tpu.dot_dimension_numbers<[1], [0], [0], [1], [0, 0, 1, 1], [], []>} : vector<16x128xbf16>, vector<128x128xbf16>, vector<16x128xf32> -> vector<16x128xf32>
    %c2_18 = arith.constant 2 : index
    %c0_19 = arith.constant 0 : index
    %c0_20 = arith.constant 0 : index
    %24 = vector.load %arg3[%c2_18, %c0_19, %c0_20] : memref<4x1x128xf32, #tpu.memory_space<vmem>>, vector<1x1x128xf32>
    %25 = vector.shape_cast %24 : vector<1x1x128xf32> to vector<1x128xf32>
    %26 = vector.broadcast %25 : vector<1x128xf32> to vector<16x128xf32>
    %27 = arith.addf %23, %26 : vector<16x128xf32>
    %cst_21 = arith.constant 0.000000e+00 : f32
    %28 = vector.broadcast %cst_21 : f32 to vector<16x128xf32>
    %29 = arith.maximumf %27, %28 : vector<16x128xf32>
    %30 = arith.truncf %29 : vector<16x128xf32> to vector<16x128xbf16>
    %c3 = arith.constant 3 : index
    %c0_22 = arith.constant 0 : index
    %c0_23 = arith.constant 0 : index
    %31 = vector.load %arg2[%c3, %c0_22, %c0_23] : memref<4x128x128xbf16, #tpu.memory_space<vmem>>, vector<1x128x128xbf16>
    %32 = vector.shape_cast %31 : vector<1x128x128xbf16> to vector<128x128xbf16>
    %cst_24 = arith.constant dense<0.000000e+00> : vector<16x128xf32>
    %33 = tpu.matmul %30, %32, %cst_24 {dimension_numbers = #tpu.dot_dimension_numbers<[1], [0], [0], [1], [0, 0, 1, 1], [], []>} : vector<16x128xbf16>, vector<128x128xbf16>, vector<16x128xf32> -> vector<16x128xf32>
    %c3_25 = arith.constant 3 : index
    %c0_26 = arith.constant 0 : index
    %c0_27 = arith.constant 0 : index
    %34 = vector.load %arg3[%c3_25, %c0_26, %c0_27] : memref<4x1x128xf32, #tpu.memory_space<vmem>>, vector<1x1x128xf32>
    %35 = vector.shape_cast %34 : vector<1x1x128xf32> to vector<1x128xf32>
    %36 = vector.broadcast %35 : vector<1x128xf32> to vector<16x128xf32>
    %37 = arith.addf %33, %36 : vector<16x128xf32>
    %c0_28 = arith.constant 0 : index
    %c0_29 = arith.constant 0 : index
    %38 = vector.load %arg4[%c0_28, %c0_29] : memref<16x128xf32, #tpu.memory_space<vmem>>, vector<16x128xf32>
    tpu.vector_store %arg4[%c0_28, %c0_29], %37 {strides = array<i32>} : memref<16x128xf32, #tpu.memory_space<vmem>>, vector<16x128xf32>,
    return
  }
  func.func @transform_0(%arg0: i32) -> (i32, i32) {
    %c0_i32 = arith.constant 0 : i32
    %c0_i32_0 = arith.constant 0 : i32
    return %arg0, %c0_i32 : i32, i32
  }
  func.func @transform_1(%arg0: i32) -> (i32, i32, i32) {
    %c0_i32 = arith.constant 0 : i32
    %c0_i32_0 = arith.constant 0 : i32
    %c0_i32_1 = arith.constant 0 : i32
    %c0_i32_2 = arith.constant 0 : i32
    return %c0_i32, %c0_i32_0, %c0_i32_1 : i32, i32, i32
  }
  func.func @transform_2(%arg0: i32) -> (i32, i32, i32) {
    %c0_i32 = arith.constant 0 : i32
    %c0_i32_0 = arith.constant 0 : i32
    %c0_i32_1 = arith.constant 0 : i32
    %c0_i32_2 = arith.constant 0 : i32
    return %c0_i32, %c0_i32_0, %c0_i32_1 : i32, i32, i32
  }
  func.func @transform_3(%arg0: i32) -> (i32, i32) {
    %c0_i32 = arith.constant 0 : i32
    %c0_i32_0 = arith.constant 0 : i32
    return %arg0, %c0_i32 : i32, i32
  }
}

</mosaic_0001>

<bundles_post_ra>
// kernel: tpu_custom_call.1
= control target key start
LH: loop header
LB: loop body
LE: loop exit
PB: predicated region body
PF: predicated region fallthrough
CT: control target
= control target key end

     0   :  { %8 = vsyncpa [#allocation3], 0  ;;  %s916_s0 = inlined_call_operand.hbm [shape: bf16[16,128], index: 0, kind: input, shape index: {}]   ;;  %s917_s1 = inlined_call_operand.hbm [shape: bf16[4,128,128], index: 1, kind: input, shape index: {}]   ;;  %s918_s2 = inlined_call_operand.hbm [shape: f32[4,1,128], index: 2, kind: input, shape index: {}]   ;;  %s919_s3 = inlined_call_operand.hbm [shape: f32[16,128], index: 3, kind: output, shape index: {}]  }
   0x1   :  { %9 = vsyncpa [#allocation6], 0 }
   0x2   :  { %10 = vsyncpa [#allocation4], 0  ;;  %s832_s12 = smov [#allocation5]   ;;  %s833_s14 = smov [#allocation2]  }
   0x3   :  { %s28_s13 = sshll.u32 %s832_s12, 4  ;;  %s16_s15 = sshll.u32 %s833_s14, 4  ;;  %s29_s13 = int_to_ptr.vmem [resolvable:$true] %s28_s13  ;;  %s17_s15 = int_to_ptr.vmem [resolvable:$true] %s16_s15 }
   0x4   :  { %s754_s16 = scalar_lea.vmem %s29_s13, 4096  ;;  %p759_p1 = scmp.lt.s32.totalorder %s29_s13, %s29_s13 }
   0x5   :  { %p755_p0 = scmp.ne.s32.totalorder %s29_s13, %s754_s16  ;;  %p760_p2 = scmp.lt.s32.totalorder %s754_s16, %s754_s16 }
   0x7   :  { %p761_p3 = por %p760_p2, %p759_p1 }
   0x9   :  { %p762_p4 = pnand %p761_p3, %p755_p0 }
   0xb   :  { %765 = shalt.err (!%p762_p4)
}
   0xc   :  { %s834_s17 = smov 64   ;;  %s835_s18 = smov 4  }
   0xd   :  { %34 = dma.hbm_to_vmem [thread:$0]  %s917_s1, 4096, %s29_s13, [#allocation6], %s834_s17, %s834_s17, %s835_s18  }
   0xe   :  { %s774_s21 = scalar_lea.vmem %s17_s15, 128  ;;  %p779_p6 = scmp.lt.s32.totalorder %s17_s15, %s17_s15 }
   0xf   :  { %p775_p5 = scmp.ne.s32.totalorder %s17_s15, %s774_s21  ;;  %p780_p7 = scmp.lt.s32.totalorder %s774_s21, %s774_s21 }
  0x11   :  { %p781_p8 = por %p780_p7, %p779_p6 }
  0x13   :  { %p782_p9 = pnand %p781_p8, %p775_p5 }
  0x15   :  { %785 = shalt.err (!%p782_p9)
}
  0x16   :  { %22 = dma.hbm_to_vmem [thread:$0]  %s916_s0, 128, %s17_s15, [#allocation3], %s834_s17, %s834_s17, %s835_s18  }
  0x17   :  { %s836_s24 = smov [#allocation7]  }
  0x18   :  { %s40_s25 = sshll.u32 %s836_s24, 4  ;;  %s41_s25 = int_to_ptr.vmem [resolvable:$true] %s40_s25 }
  0x19   :  { %s794_s26 = scalar_lea.vmem %s41_s25, 64  ;;  %p799_p11 = scmp.lt.s32.totalorder %s41_s25, %s41_s25 }
  0x1a   :  { %p795_p10 = scmp.ne.s32.totalorder %s41_s25, %s794_s26  ;;  %p800_p12 = scmp.lt.s32.totalorder %s794_s26, %s794_s26 }
  0x1c   :  { %p801_p13 = por %p800_p12, %p799_p11 }
  0x1e   :  { %p802_p0 = pnand %p801_p13, %p795_p10 }
  0x20   :  { %805 = shalt.err (!%p802_p0)
}
  0x21   :  { %s837_s1 = smov 16   ;;  %s838_s27 = smov 1  }
  0x22   :  { %46 = dma.hbm_to_vmem [thread:$0]  %s918_s2, 64, %s41_s25, [#allocation6], %s837_s1, %s837_s1, %s838_s27  }
  0x23   :  { %826 = dma.done.wait [#allocation3], 128  }
  0x24   :  { %827 = vsyncadd [#allocation3], 4294967168 }
  0x25   :  { %828 = dma.done.wait [#allocation6], 4160  }
  0x26   :  { %829 = vsyncadd [#allocation6], 4294963136  ;;  %v839_v0 = vmov 0.0   ;;  %vm840_vm0 = vmmov 0   ;;  %v713_v1 = vld [vmem:[#allocation5 + $0x38] sm:$0xff]   ;;  %v714_v2 = vld [vmem:[#allocation5 + $0x30] sm:$0xff]  }
  0x27   :  { %621 = vmatprep.subr.bf16.mxu0 %v839_v0  ;;  %637 = vmatprep.mubr.msk.bf16.mxu0 %vm840_vm0, %v839_v0  ;;  %v715_v3 = vld [vmem:[#allocation5 + $0x28] sm:$0xff]   ;;  %v722_v4 = vld [vmem:[#allocation5 + $0x78] sm:$0xff]   ;;  %v716_v5 = vld [vmem:[#allocation5 + $0x20] sm:$0xff]   ;;  %s841_s0 = smov [#allocation8]  }
  0x28   :  { %641 = vmatprep.subr.bf16.mxu1 %v839_v0  ;;  %657 = vmatprep.mubr.msk.bf16.mxu1 %vm840_vm0, %v839_v0  ;;  %v723_v6 = vld [vmem:[#allocation5 + $0x70] sm:$0xff]   ;;  %v717_v7 = vld [vmem:[#allocation5 + $0x18] sm:$0xff]   ;;  %v724_v8 = vld [vmem:[#allocation5 + $0x68] sm:$0xff]   ;;  %s535_s2 = sshll.u32 %s841_s0, 4  ;;  %s536_s2 = int_to_ptr.vmem [resolvable:$true] %s535_s2 }
  0x29   :  { %622 = vmatpush3.bf16.msra.mxu0 %v713_v1  ;;  %642 = vmatpush3.bf16.msra.mxu1 %v722_v4  ;;  %v718_v9 = vld [vmem:[#allocation5 + $0x10] sm:$0xff]   ;;  %v725_v10 = vld [vmem:[#allocation5 + $0x60] sm:$0xff]   ;;  %v719_v11 = vld [vmem:[#allocation5 + $0x8] sm:$0xff]   ;;  %s806_s30 = scalar_lea.vmem %s536_s2, 256  ;;  %p811_p2 = scmp.lt.s32.totalorder %s536_s2, %s536_s2 }
  0x2a   :  { %623 = vmatprep.subr.bf16.mxu0 %v839_v0  ;;  %643 = vmatprep.subr.bf16.mxu1 %v839_v0  ;;  %v726_v12 = vld [vmem:[#allocation5 + $0x58] sm:$0xff]   ;;  %v720_v13 = vld [vmem:[#allocation5] sm:$0xff]   ;;  %v727_v15 = vld [vmem:[#allocation5 + $0x50] sm:$0xff]   ;;  %p807_p1 = scmp.ne.s32.totalorder %s536_s2, %s806_s30  ;;  %p812_p3 = scmp.lt.s32.totalorder %s806_s30, %s806_s30 }
  0x2b   :  { %v721_v14 = vld [vmem:[#allocation2] sm:$0xff]   ;;  %v728_v16 = vld [vmem:[#allocation5 + $0x48] sm:$0xff]   ;;  %v729_v17 = vld [vmem:[#allocation5 + $0x40] sm:$0xff]  }
  0x2c   :  { %v730_v18 = vld [vmem:[#allocation5 + $0xb8] sm:$0xff]   ;;  %v731_v19 = vld [vmem:[#allocation5 + $0xb0] sm:$0xff]   ;;  %v732_v20 = vld [vmem:[#allocation5 + $0xa8] sm:$0xff]   ;;  %p813_p4 = por %p812_p3, %p811_p2 }
  0x2d   :  { %624 = vmatpush3.bf16.msra.mxu0 %v714_v2  ;;  %644 = vmatpush3.bf16.msra.mxu1 %v723_v6  ;;  %v733_v21 = vld [vmem:[#allocation5 + $0xa0] sm:$0xff]   ;;  %v734_v22 = vld [vmem:[#allocation5 + $0x98] sm:$0xff]   ;;  %v735_v33 = vld [vmem:[#allocation5 + $0x90] sm:$0xff]  }
  0x2e   :  { %625 = vmatprep.subr.bf16.mxu0 %v839_v0  ;;  %645 = vmatprep.subr.bf16.mxu1 %v839_v0  ;;  %v548_v23 = vld [vmem:[#allocation7] ss:$0 sm:$0xff]  ;;  %v736_v34 = vld [vmem:[#allocation5 + $0x88] sm:$0xff]   ;;  %v738_v36 = vld [vmem:[#allocation5 + $0xf8] sm:$0xff]   ;;  %p814_p5 = pnand %p813_p4, %p807_p1 }
  0x2f   :  { %v737_v35 = vld [vmem:[#allocation5 + $0x80] sm:$0xff]   ;;  %v739_v37 = vld [vmem:[#allocation5 + $0xf0] sm:$0xff]   ;;  %v740_v38 = vld [vmem:[#allocation5 + $0xe8] sm:$0xff]  }
  0x30   :  { %v741_v39 = vld [vmem:[#allocation5 + $0xe0] sm:$0xff]   ;;  %v742_v40 = vld [vmem:[#allocation5 + $0xd8] sm:$0xff]   ;;  %v743_v51 = vld [vmem:[#allocation5 + $0xd0] sm:$0xff]  }
  0x31   :  { %626 = vmatpush3.bf16.msra.mxu0 %v715_v3  ;;  %646 = vmatpush3.bf16.msra.mxu1 %v724_v8  ;;  %v558_v41 = vld [vmem:[#allocation7 + $0x1] ss:$0 sm:$0xff]  ;;  %v744_v52 = vld [vmem:[#allocation5 + $0xc8] sm:$0xff]   ;;  %v567_v54 = vld [vmem:[#allocation7 + $0x2] ss:$0 sm:$0xff] }
  0x32   :  { %627 = vmatprep.subr.bf16.mxu0 %v839_v0  ;;  %647 = vmatprep.subr.bf16.mxu1 %v839_v0  ;;  %v745_v53 = vld [vmem:[#allocation5 + $0xc0] sm:$0xff]  }
  0x33   :  { %v576_v1 = vld [vmem:[#allocation7 + $0x3] ss:$0 sm:$0xff] }
  0x35   :  { %628 = vmatpush3.bf16.msra.mxu0 %v716_v5  ;;  %648 = vmatpush3.bf16.msra.mxu1 %v725_v10 }
  0x36   :  { %629 = vmatprep.subr.bf16.mxu0 %v839_v0  ;;  %649 = vmatprep.subr.bf16.mxu1 %v839_v0 }
  0x39   :  { %630 = vmatpush3.bf16.msra.mxu0 %v717_v7  ;;  %650 = vmatpush3.bf16.msra.mxu1 %v726_v12 }
  0x3a   :  { %631 = vmatprep.subr.bf16.mxu0 %v839_v0  ;;  %651 = vmatprep.subr.bf16.mxu1 %v839_v0 }
  0x3d   :  { %632 = vmatpush3.bf16.msra.mxu0 %v718_v9  ;;  %652 = vmatpush3.bf16.msra.mxu1 %v727_v15 }
  0x3e   :  { %633 = vmatprep.subr.bf16.mxu0 %v839_v0  ;;  %653 = vmatprep.subr.bf16.mxu1 %v839_v0 }
  0x41   :  { %634 = vmatpush3.bf16.msra.mxu0 %v719_v11  ;;  %654 = vmatpush3.bf16.msra.mxu1 %v728_v16 }
  0x42   :  { %635 = vmatprep.subr.bf16.mxu0 %v839_v0  ;;  %655 = vmatprep.subr.bf16.mxu1 %v839_v0 }
  0x45   :  { %636 = vmatpush3.bf16.msra.mxu0 %v720_v13  ;;  %656 = vmatpush3.bf16.msra.mxu1 %v729_v17 }
  0x46   :  { %661 = vmatprep.subr.bf16.mxu0 %v839_v0  ;;  %681 = vmatprep.subr.bf16.mxu1 %v839_v0 }
  0x48   :  { %638 = vmatmul.mubr.bf16.vlgmr.msra.gmra.mxu0 %v721_v14 }
  0x49   :  { %677 = vmatprep.mubr.msk.bf16.mxu0 %vm840_vm0, %v839_v0  ;;  %662 = vmatpush3.bf16.msra.mxu0 %v730_v18 }
  0x4a   :  { %663 = vmatprep.subr.bf16.mxu0 %v839_v0 }
  0x4d   :  { %664 = vmatpush3.bf16.msra.mxu0 %v731_v19 }
  0x4e   :  { %665 = vmatprep.subr.bf16.mxu0 %v839_v0 }
  0x51   :  { %666 = vmatpush3.bf16.msra.mxu0 %v732_v20 }
  0x52   :  { %667 = vmatprep.subr.bf16.mxu0 %v839_v0 }
  0x55   :  { %668 = vmatpush3.bf16.msra.mxu0 %v733_v21 }
  0x56   :  { %669 = vmatprep.subr.bf16.mxu0 %v839_v0 }
  0x59   :  { %670 = vmatpush3.bf16.msra.mxu0 %v734_v22 }
  0x5a   :  { %671 = vmatprep.subr.bf16.mxu0 %v839_v0 }
  0x5d   :  { %672 = vmatpush3.bf16.msra.mxu0 %v735_v33 }
  0x5e   :  { %673 = vmatprep.subr.bf16.mxu0 %v839_v0 }
  0x61   :  { %674 = vmatpush3.bf16.msra.mxu0 %v736_v34 }
  0x62   :  { %675 = vmatprep.subr.bf16.mxu0 %v839_v0 }
  0x65   :  { %676 = vmatpush3.bf16.msra.mxu0 %v737_v35 }
 0x108   :  { %v170_v24 = vpop.f32.mrf.mxu0 }
 0x109   :  { %v171_v26 = vadd.f32 %v548_v23, %v170_v24 }
 0x10a   :  { %v639_v25 = vpop.f32.mrf.mxu0 }
 0x10b   :  { %v177_v30 = vmax.f32 %v171_v26, 0.0 }
 0x10c   :  { %v173_v27 = vpop.f32.mrf.mxu0 }
 0x10d   :  { %v174_v28 = vadd.f32 %v548_v23, %v173_v27 }
 0x10e   :  { %v640_v29 = vpop.f32.mrf.mxu0 }
 0x10f   :  { %v178_v31 = vmax.f32 %v174_v28, 0.0 }
 0x111   :  { %v179_v32 = vpack.c.bf16 %v178_v31, %v177_v30 }
 0x113   :  { %658 = vmatmul.mubr.bf16.vlgmr.msra.gmra.mxu1 %v179_v32 }
 0x114   :  { %697 = vmatprep.mubr.msk.bf16.mxu1 %vm840_vm0, %v839_v0  ;;  %682 = vmatpush3.bf16.msra.mxu1 %v738_v36 }
 0x115   :  { %683 = vmatprep.subr.bf16.mxu1 %v839_v0 }
 0x118   :  { %684 = vmatpush3.bf16.msra.mxu1 %v739_v37 }
 0x119   :  { %685 = vmatprep.subr.bf16.mxu1 %v839_v0 }
 0x11c   :  { %686 = vmatpush3.bf16.msra.mxu1 %v740_v38 }
 0x11d   :  { %687 = vmatprep.subr.bf16.mxu1 %v839_v0 }
 0x120   :  { %688 = vmatpush3.bf16.msra.mxu1 %v741_v39 }
 0x121   :  { %689 = vmatprep.subr.bf16.mxu1 %v839_v0 }
 0x124   :  { %690 = vmatpush3.bf16.msra.mxu1 %v742_v40 }
 0x125   :  { %691 = vmatprep.subr.bf16.mxu1 %v839_v0 }
 0x128   :  { %692 = vmatpush3.bf16.msra.mxu1 %v743_v51 }
 0x129   :  { %693 = vmatprep.subr.bf16.mxu1 %v839_v0 }
 0x12c   :  { %694 = vmatpush3.bf16.msra.mxu1 %v744_v52 }
 0x12d   :  { %695 = vmatprep.subr.bf16.mxu1 %v839_v0 }
 0x130   :  { %696 = vmatpush3.bf16.msra.mxu1 %v745_v53 }
 0x1d3   :  { %v287_v42 = vpop.f32.mrf.mxu1 }
 0x1d4   :  { %v288_v44 = vadd.f32 %v558_v41, %v287_v42 }
 0x1d5   :  { %v659_v43 = vpop.f32.mrf.mxu1 }
 0x1d6   :  { %v294_v48 = vmax.f32 %v288_v44, 0.0 }
 0x1d7   :  { %v290_v45 = vpop.f32.mrf.mxu1 }
 0x1d8   :  { %v291_v46 = vadd.f32 %v558_v41, %v290_v45 }
 0x1d9   :  { %v660_v47 = vpop.f32.mrf.mxu1 }
 0x1da   :  { %v295_v49 = vmax.f32 %v291_v46, 0.0 }
 0x1dc   :  { %v296_v50 = vpack.c.bf16 %v295_v49, %v294_v48 }
 0x1de   :  { %678 = vmatmul.mubr.bf16.vlgmr.msra.gmra.mxu0 %v296_v50 }
 0x29e   :  { %v404_v55 = vpop.f32.mrf.mxu0 }
 0x29f   :  { %v405_v57 = vadd.f32 %v567_v54, %v404_v55 }
 0x2a0   :  { %v679_v56 = vpop.f32.mrf.mxu0 }
 0x2a1   :  { %v411_v61 = vmax.f32 %v405_v57, 0.0 }
 0x2a2   :  { %v407_v58 = vpop.f32.mrf.mxu0 }
 0x2a3   :  { %v408_v59 = vadd.f32 %v567_v54, %v407_v58 }
 0x2a4   :  { %v680_v60 = vpop.f32.mrf.mxu0 }
 0x2a5   :  { %v412_v62 = vmax.f32 %v408_v59, 0.0 }
 0x2a7   :  { %v413_v63 = vpack.c.bf16 %v412_v62, %v411_v61 }
 0x2a9   :  { %698 = vmatmul.mubr.bf16.vlgmr.msra.gmra.mxu1 %v413_v63 }
 0x369   :  { %v521_v2 = vpop.f32.mrf.mxu1 }
 0x36a   :  { %v522_v3 = vadd.f32 %v576_v1, %v521_v2 }
 0x36b   :  { %v699_v4 = vpop.f32.mrf.mxu1 }
 0x36c   :  { %528 = vst [vmem:[#allocation8] sm:$0xff] %v522_v3 }
 0x36d   :  { %v524_v0 = vpop.f32.mrf.mxu1 }
 0x36e   :  { %v525_v5 = vadd.f32 %v576_v1, %v524_v0 }
 0x36f   :  { %v700_v6 = vpop.f32.mrf.mxu1 }
 0x370   :  { %529 = vst [vmem:[#allocation8 + $0x8] sm:$0xff] %v525_v5 }
 0x371   :  { %817 = shalt.err (!%p814_p5)
}
 0x372   :  { %s842_s4 = smov 128   ;;  %s843_s5 = smov 8  }
 0x373   :  { %541 = dma.vmem_to_hbm [thread:$0]  %s536_s2, 256, %s919_s3, [#allocation4], %s842_s4, %s842_s4, %s843_s5  }
 0x374   :  { %830 = dma.done.wait [#allocation4], 256  }
 0x375   :  { %831 = vsyncadd [#allocation4], 4294967040 }
 0x376   :  { %545 = vsyncpa [#allocation3], 1 }
 0x377   :  { %546 = vsyncpa [#allocation6], 1 }
 0x378   :  { %547 = vsyncpa [#allocation4], 1 }

</bundles_post_ra>
